<compile_context>
chip_gen: v7x
topology: tpu7x:2x2x1
jax: 0.10.0
libtpu: 0.0.40
codegen_flags: <defaults>
</compile_context>

<pallas_src>
import functools

import jax
import jax.numpy as jnp
from jax import lax
from jax.experimental import pallas as pl
from jax.experimental.pallas import tpu as pltpu


def _rmsnorm_kernel(x_ref, w_ref, o_ref, *, eps, inv_dim, add_unit_offset):
    # x_ref: (tile_rows, dim_p), w_ref: (1, dim_p) f32, o_ref: (tile_rows, dim_p)
    # Pass 1: cast -> square -> cross-lane reduce. Padded lanes are zero, so
    # sum * (1/true_dim) == mean over the true feature dim.
    xf = x_ref[...].astype(jnp.float32)
    ms = jnp.sum(xf * xf, axis=-1, keepdims=True) * inv_dim
    scale = lax.rsqrt(ms + eps)                          # EUP rsqrt (free slot)
    # Pass 2: re-read x_ref so the compiler does not hold a second full-tile
    # f32 temporary live across the reduction (VMEM scratch, not a real load
    # cost: this kernel is HBM-bandwidth-bound with huge vld slack).
    xn = x_ref[...].astype(jnp.float32) * scale
    xn = xn.astype(x_ref.dtype)                          # .type_as(x)
    w = w_ref[...]                                       # f32 weight
    if add_unit_offset:
        out = xn.astype(jnp.float32) * (1.0 + w)
    else:
        out = xn.astype(jnp.float32) * w
    o_ref[...] = out.astype(o_ref.dtype)


def _choose_tile_rows(rows, dim_p, dtype):
    """Byte-based row-tile size from the per-TensorCore VMEM budget."""
    itemsize = jnp.dtype(dtype).itemsize
    # Sublane packing: f32 -> 8, bf16 -> 16, int8/fp8 -> 32.
    pack = max(8, 32 // itemsize)

    vmem_reported = 64 * 1024 * 1024
    num_cores = 1
    try:
        info = pltpu.get_tpu_info()
        vmem_reported = int(info.vmem_capacity_bytes)
        for name in ("num_cores", "core_count", "num_tensorcores",
                     "tensorcores_per_chip"):
            v = getattr(info, name, None)
            if isinstance(v, int) and v > 0:
                num_cores = v
                break
    except Exception:
        pass

    # Per-TC budget, hard-clamped at v7x's 64 MiB/TC so a chip-level report
    # can't make us overshoot; the byte cap below already keeps 128 MiB parts
    # in the measured ~85%-of-roofline regime.
    vmem_per_core = min(vmem_reported, 64 * 1024 * 1024)
    budget = (vmem_per_core * 70) // 100

    # Per-row VMEM: double-buffered input + double-buffered output in the
    # activation dtype, plus ~2 f32-sized temporaries for the norm math.
    per_row_bytes = dim_p * (4 * itemsize + 8)

    t = budget // per_row_bytes
    # Byte-based step cap: ~8 MiB of input per grid step keeps the ~0.35 us
    # per-step overhead negligible on every generation (incl. v7x @ 3.2 TB/s)
    # while leaving multiple steps for pipelining on big inputs.
    t = min(t, max(pack, (8 << 20) // (dim_p * itemsize)))
    # Never request a block taller than the (sublane-rounded) row extent.
    rows_padded = -(-rows // pack) * pack
    t = min(t, rows_padded)

    # Multi-TC (v7x): give every core >= 2 blocks so double-buffering hides
    # the DMA prologue/epilogue. Single-TC (v5e/v6e): keep the biggest tile.
    if num_cores >= 2:
        min_blocks = 2 * num_cores
        if rows_padded >= min_blocks * pack:
            per_block = -(-rows // min_blocks)
            per_block = -(-per_block // pack) * pack
            t = min(t, per_block)

    t = max(pack, (t // pack) * pack)
    return t, per_row_bytes, vmem_per_core


def rmsnorm(x, weight, *, eps=1e-6, add_unit_offset=True, tile_rows=None):
    """Pallas RMSNorm over the last dim of x. weight has shape (dim,)."""
    orig_shape = x.shape
    dim = orig_shape[-1]
    rows = 1
    for s in orig_shape[:-1]:
        rows *= s

    # Lane-dense last dim: pad to a multiple of 128 (full-width stores).
    dim_p = ((dim + 127) // 128) * 128
    x2d = x.reshape(rows, dim)
    w2d = weight.reshape(1, dim).astype(jnp.float32)
    if dim_p != dim:
        x2d = jnp.pad(x2d, ((0, 0), (0, dim_p - dim)))
        w2d = jnp.pad(w2d, ((0, 0), (0, dim_p - dim)))

    itemsize = jnp.dtype(x.dtype).itemsize
    auto_t, per_row_bytes, vmem_per_core = _choose_tile_rows(rows, dim_p, x.dtype)
    if tile_rows is None:
        tile_rows = auto_t

    # Rows are independent, so the ragged last row-block (Pallas masks the
    # out-of-bounds output rows) never leaks garbage into valid rows.
    grid = (pl.cdiv(rows, tile_rows),)

    # VMEM limit = estimated working set (+ double-buffered weight) with ~25%
    # headroom for compiler temps, capped under the per-TC capacity.
    working_set = tile_rows * per_row_bytes + 2 * dim_p * 4
    vmem_limit = int(working_set * 1.25) + (1 << 20)
    vmem_limit = int(max(16 << 20, min(vmem_limit, (vmem_per_core * 95) // 100)))

    cost = pl.CostEstimate(
        flops=5 * rows * dim_p,
        transcendentals=rows,
        bytes_accessed=2 * rows * dim_p * itemsize + dim_p * 4,
    )

    # TODO(synk): weight block index is constant across steps; if Mosaic still
    # re-DMAs it per step, a pipeline_mode=pl.Buffered(1) on that spec would
    # save a tiny per-step DMA + dim_p*4 bytes of VMEM.
    out2d = pl.pallas_call(
        functools.partial(_rmsnorm_kernel, eps=eps, inv_dim=1.0 / dim,
                          add_unit_offset=add_unit_offset),
        out_shape=jax.ShapeDtypeStruct((rows, dim_p), x.dtype),
        grid_spec=pltpu.PrefetchScalarGridSpec(
            num_scalar_prefetch=0,
            grid=grid,
            in_specs=[
                pl.BlockSpec((tile_rows, dim_p), lambda i: (i, 0)),
                pl.BlockSpec((1, dim_p), lambda i: (0, 0)),
            ],
            out_specs=pl.BlockSpec((tile_rows, dim_p), lambda i: (i, 0)),
        ),
        compiler_params=pltpu.CompilerParams(
            dimension_semantics=("parallel",),
            vmem_limit_bytes=vmem_limit),
        cost_estimate=cost,
    )(x2d, w2d)

    if dim_p != dim:
        out2d = out2d[:, :dim]
    return out2d.reshape(orig_shape)


def rmsnorm_ref(x, weight, *, eps=1e-6, add_unit_offset=True):
    """Pure-JAX reference mirroring the PyTorch module."""
    xf = x.astype(jnp.float32)
    xn = xf * lax.rsqrt(jnp.mean(xf * xf, axis=-1, keepdims=True) + eps)
    xn = xn.astype(x.dtype)
    w = weight.astype(jnp.float32)
    if add_unit_offset:
        out = xn.astype(jnp.float32) * (1.0 + w)
    else:
        out = xn.astype(jnp.float32) * w
    return out.astype(x.dtype)


if __name__ == "__main__":
    key = jax.random.PRNGKey(0)
    k1, k2, k3, k4, k5, k6 = jax.random.split(key, 6)

    # Case 1: canonical module shape (dim < 128 -> lane padding path), f32.
    batch, seq, hidden = 2, 8, 32
    x1 = jax.random.normal(k1, (batch, seq, hidden), dtype=jnp.float32)
    # Module initializes weight to zeros(dim); perturb slightly so the
    # (1 + weight) path is exercised.
    w1 = 0.01 * jax.random.normal(k2, (hidden,), dtype=jnp.float32)
    o1 = jax.block_until_ready(rmsnorm(x1, w1, eps=1e-6, add_unit_offset=True))
    r1 = rmsnorm_ref(x1, w1, eps=1e-6, add_unit_offset=True)
    assert o1.shape == x1.shape and o1.dtype == x1.dtype
    assert jnp.allclose(o1, r1, atol=1e-5, rtol=1e-5)

    # Case 2: lane-dense dim, ragged last row block, add_unit_offset=False.
    x2 = jax.random.normal(k3, (3, 50, 256), dtype=jnp.float32)
    w2 = 1.0 + 0.02 * jax.random.normal(k4, (256,), dtype=jnp.float32)
    o2 = jax.block_until_ready(rmsnorm(x2, w2, eps=1e-6, add_unit_offset=False))
    r2 = rmsnorm_ref(x2, w2, eps=1e-6, add_unit_offset=False)
    assert jnp.allclose(o2, r2, atol=1e-5, rtol=1e-5)

    # Case 3: bf16 activations with f32 weight (f32 epilogue, cast at store).
    x3 = jax.random.normal(k5, (2, 16, 256), dtype=jnp.bfloat16)
    w3 = 0.05 * jax.random.normal(k6, (256,), dtype=jnp.float32)
    o3 = jax.block_until_ready(rmsnorm(x3, w3))
    r3 = rmsnorm_ref(x3, w3)
    assert o3.dtype == jnp.bfloat16
    assert jnp.allclose(o3.astype(jnp.float32), r3.astype(jnp.float32),
                        atol=2e-2, rtol=2e-2)

    print("KERNEL_OK")
</pallas_src>

<mosaic_0001>
module attributes {stable_mosaic.version = 11 : i64} {
  func.func @_rmsnorm_kernel(%arg0: i32, %arg1: memref<16x128xf32, #tpu.memory_space<vmem>>, %arg2: memref<1x128xf32, #tpu.memory_space<vmem>>, %arg3: memref<16x128xf32, #tpu.memory_space<vmem>>) attributes {dimension_semantics = [#tpu.dimension_semantics<parallel>], iteration_bounds = array<i64: 1>, scalar_prefetch = 0 : i64, scratch_operands = 0 : i64, tpu.core_type = #tpu.core_type<tc>, window_params = [{transform_indices = @transform_0, window_bounds = array<i64: 16, 128>}, {pipeline_mode = #tpu.pipeline_mode<synchronous>, transform_indices = @transform_1, window_bounds = array<i64: 1, 128>}, {transform_indices = @transform_2, window_bounds = array<i64: 16, 128>}]} {
    %c0 = arith.constant 0 : index
    %c0_0 = arith.constant 0 : index
    %0 = vector.load %arg1[%c0, %c0_0] : memref<16x128xf32, #tpu.memory_space<vmem>>, vector<16x128xf32>
    %1 = arith.mulf %0, %0 : vector<16x128xf32>
    %cst = arith.constant dense<0.000000e+00> : vector<16xf32>
    %2 = vector.multi_reduction <add>, %1, %cst [1] : vector<16x128xf32> to vector<16xf32>
    %3 = vector.shape_cast %2 : vector<16xf32> to vector<16x1xf32>
    %cst_1 = arith.constant 3.125000e-02 : f32
    %4 = vector.broadcast %cst_1 : f32 to vector<16x1xf32>
    %5 = arith.mulf %3, %4 : vector<16x1xf32>
    %cst_2 = arith.constant 9.99999997E-7 : f32
    %6 = vector.broadcast %cst_2 : f32 to vector<16x1xf32>
    %7 = arith.addf %5, %6 : vector<16x1xf32>
    %8 = math.rsqrt %7 : vector<16x1xf32>
    %c0_3 = arith.constant 0 : index
    %c0_4 = arith.constant 0 : index
    %9 = vector.load %arg1[%c0_3, %c0_4] : memref<16x128xf32, #tpu.memory_space<vmem>>, vector<16x128xf32>
    %10 = vector.broadcast %8 : vector<16x1xf32> to vector<16x128xf32>
    %11 = arith.mulf %9, %10 : vector<16x128xf32>
    %c0_5 = arith.constant 0 : index
    %c0_6 = arith.constant 0 : index
    %12 = vector.load %arg2[%c0_5, %c0_6] : memref<1x128xf32, #tpu.memory_space<vmem>>, vector<1x128xf32>
    %cst_7 = arith.constant 1.000000e+00 : f32
    %13 = vector.broadcast %cst_7 : f32 to vector<1x128xf32>
    %14 = arith.addf %13, %12 : vector<1x128xf32>
    %15 = vector.broadcast %14 : vector<1x128xf32> to vector<16x128xf32>
    %16 = arith.mulf %11, %15 : vector<16x128xf32>
    %c0_8 = arith.constant 0 : index
    %c0_9 = arith.constant 0 : index
    %17 = vector.load %arg3[%c0_8, %c0_9] : memref<16x128xf32, #tpu.memory_space<vmem>>, vector<16x128xf32>
    tpu.vector_store %arg3[%c0_8, %c0_9], %16 {strides = array<i32>} : memref<16x128xf32, #tpu.memory_space<vmem>>, vector<16x128xf32>,
    return
  }
  func.func @transform_0(%arg0: i32) -> (i32, i32) {
    %c0_i32 = arith.constant 0 : i32
    %c0_i32_0 = arith.constant 0 : i32
    return %arg0, %c0_i32 : i32, i32
  }
  func.func @transform_1(%arg0: i32) -> (i32, i32) {
    %c0_i32 = arith.constant 0 : i32
    %c0_i32_0 = arith.constant 0 : i32
    %c0_i32_1 = arith.constant 0 : i32
    return %c0_i32, %c0_i32_0 : i32, i32
  }
  func.func @transform_2(%arg0: i32) -> (i32, i32) {
    %c0_i32 = arith.constant 0 : i32
    %c0_i32_0 = arith.constant 0 : i32
    return %arg0, %c0_i32 : i32, i32
  }
}

</mosaic_0001>

<bundles_post_ra>
// kernel: tpu_custom_call.1
= control target key start
LH: loop header
LB: loop body
LE: loop exit
PB: predicated region body
PF: predicated region fallthrough
CT: control target
= control target key end

     0   :  { %7 = vsyncpa [#allocation3], 0  ;;  %s179_s0 = inlined_call_operand.hbm [shape: f32[16,128], index: 0, kind: input, shape index: {}]   ;;  %s180_s1 = inlined_call_operand.vmem [shape: f32[1,128], index: 1, kind: input, shape index: {}]   ;;  %s181_s2 = inlined_call_operand.hbm [shape: f32[16,128], index: 2, kind: output, shape index: {}]  }
   0x1   :  { %8 = vsyncpa [#allocation4], 0  ;;  %s127_s9 = smov [#allocation2]   ;;  %s79_s13 = scalar_lea.hbm %s179_s0, 256 }
   0x2   :  { %s14_s10 = sshll.u32 %s127_s9, 4  ;;  %p80_p0 = scmp.ne.s32.totalorder %s179_s0, %s79_s13  ;;  %s15_s10 = int_to_ptr.vmem [resolvable:$true] %s14_s10 }
   0x3   :  { %p83_p1 = scmp.lt.u32.totalorder %s79_s13, %s179_s0 }
   0x5   :  { %p85_p2 = pnand %p83_p1, %p80_p0 }
   0x7   :  { %88 = shalt.err (!%p85_p2)
}
   0x8   :  { %s89_s18 = scalar_lea.vmem %s15_s10, 256  ;;  %p94_p4 = scmp.lt.s32.totalorder %s15_s10, %s15_s10 }
   0x9   :  { %p90_p3 = scmp.ne.s32.totalorder %s15_s10, %s89_s18  ;;  %p95_p5 = scmp.lt.s32.totalorder %s89_s18, %s89_s18 }
   0xb   :  { %p96_p6 = por %p95_p5, %p94_p4 }
   0xd   :  { %p97_p7 = pnand %p96_p6, %p90_p3 }
   0xf   :  { %100 = shalt.err (!%p97_p7)
}
  0x10   :  { %s128_s19 = smov 128   ;;  %s129_s20 = smov 8  }
  0x11   :  { %20 = dma.hbm_to_vmem [thread:$0]  %s179_s0, 256, %s15_s10, [#allocation3], %s128_s19, %s128_s19, %s129_s20  }
  0x12   :  { %123 = dma.done.wait [#allocation3], 256  }
  0x13   :  { %124 = vsyncadd [#allocation3], 4294967040  ;;  %v26_v0 = vld [vmem:[#allocation2] sm:$0xff]  ;;  %v27_v1 = vld [vmem:[#allocation2 + $0x8] sm:$0xff]  ;;  %v45_v6 = vlaneseq  ;;  %s130_s0 = smov [#allocation5]  }
  0x14   :  { %v28_v2 = vmul.f32 %v26_v0, %v26_v0  ;;  %v29_v3 = vmul.f32 %v27_v1, %v27_v1  ;;  %v42_v12 = vld [vmem:[%s180_s1] sm:$0x1]  ;;  %s59_s25 = sshll.u32 %s130_s0, 4  ;;  %s60_s25 = int_to_ptr.vmem [resolvable:$true] %s59_s25 }
  0x15   :  { %v46_v10 = vshrl.u32 %v45_v6, 7  ;;  %v43_v13 = vadd.f32 1.0, %v42_v12  ;;  %s101_s26 = scalar_lea.vmem %s60_s25, 256  ;;  %p106_p9 = scmp.lt.s32.totalorder %s60_s25, %s60_s25 }
  0x16   :  { %30 = vadd.xlane.f32.xlu0 %v28_v2  ;;  %p102_p8 = scmp.ne.s32.totalorder %s60_s25, %s101_s26  ;;  %p107_p10 = scmp.lt.s32.totalorder %s101_s26, %s101_s26 }
  0x17   :  { %v47_v14 = vsub.s32 0, %v46_v10 }
  0x18   :  { %p108_p11 = por %p107_p10, %p106_p9 }
  0x19   :  { %v48_v15 = vrot.slane %v43_v13, %v47_v14 }
  0x1a   :  { %32 = vadd.xlane.f32.xlu0 %v29_v3  ;;  %p109_p12 = pnand %p108_p11, %p102_p8 }
  0xa3   :  { %v31_v4 = vpop.xlane.xlu0 %30 }
  0xa4   :  { %v34_v5 = vmul.f32 0.03125, %v31_v4 }
  0xa6   :  { %v36_v7 = vadd.f32 1e-06, %v34_v5 }
  0xa7   :  { %v33_v8 = vpop.xlane.xlu0 %32 }
  0xa8   :  { %75 = vrsqrt.f32 %v36_v7  ;;  %v35_v9 = vmul.f32 0.03125, %v33_v8 }
  0xaa   :  { %v37_v11 = vadd.f32 1e-06, %v35_v9 }
  0xac   :  { %77 = vrsqrt.f32 %v37_v11 }
  0xb2   :  { %v76_v16 = vpop.eup %75 }
  0xb3   :  { %v40_v17 = vmul.f32 %v76_v16, %v26_v0 }
  0xb5   :  { %v50_v18 = vmul.f32 %v48_v15, %v40_v17 }
  0xb6   :  { %v78_v19 = vpop.eup %77 }
  0xb7   :  { %v41_v20 = vmul.f32 %v78_v19, %v27_v1  ;;  %52 = vst [vmem:[#allocation5] sm:$0xff] %v50_v18 }
  0xb9   :  { %v51_v21 = vmul.f32 %v48_v15, %v41_v20 }
  0xbb   :  { %53 = vst [vmem:[#allocation5 + $0x8] sm:$0xff] %v51_v21 }
  0xbc   :  { %112 = shalt.err (!%p109_p12)
}
  0xbd   :  { %s113_s28 = scalar_lea.hbm %s181_s2, 256 }
  0xbe   :  { %p114_p13 = scmp.ne.s32.totalorder %s181_s2, %s113_s28  ;;  %p117_p0 = scmp.lt.u32.totalorder %s113_s28, %s181_s2 }
  0xc0   :  { %p119_p1 = pnand %p117_p0, %p114_p13 }
  0xc2   :  { %122 = shalt.err (!%p119_p1)
}
  0xc3   :  { %65 = dma.vmem_to_hbm [thread:$0]  %s60_s25, 256, %s181_s2, [#allocation4], %s128_s19, %s128_s19, %s129_s20  }
  0xc4   :  { %125 = dma.done.wait [#allocation4], 256  }
  0xc5   :  { %126 = vsyncadd [#allocation4], 4294967040 }
  0xc6   :  { %69 = vsyncpa [#allocation3], 1 }
  0xc7   :  { %70 = vsyncpa [#allocation4], 1 }

</bundles_post_ra>
